<compile_context>
chip_gen: v7x
topology: tpu7x:2x2x1
jax: 0.10.0
libtpu: 0.0.40
codegen_flags: <defaults>
</compile_context>

<pallas_src>
import math

import jax
import jax.numpy as jnp
from jax import lax
from jax.experimental import pallas as pl
from jax.experimental.pallas import tpu as pltpu


_MASK_NEG = -1e30  # finite "masked" score: fully-masked rows give a uniform
                   # average over V instead of NaN (intentional divergence
                   # from the reference's undefined softmax).


# ---------------------------------------------------------------------------
# Chip-aware sizing
# ---------------------------------------------------------------------------
def _tpu_vmem_capacity_bytes():
    try:
        return int(pltpu.get_tpu_info().vmem_capacity_bytes)
    except Exception:  # no TPU info available -> assume the smallest (v7x)
        return 64 * 1024 * 1024


_VMEM_CAP = _tpu_vmem_capacity_bytes()
_BIG_VMEM = _VMEM_CAP >= 96 * 1024 * 1024          # v5e/v6e (128 MiB) vs v7x (64 MiB)
_VMEM_LIMIT = int(min(96 * 1024 * 1024, (_VMEM_CAP * 3) // 4))
# Preferred attention tiles: 256 where VMEM allows (v5e/v6e), 128 on v7x/f32.
_ATTN_TILE_PREF = 256 if _BIG_VMEM else 128


def _pick_tile(dim, pref, align):
    """Largest tile t <= pref with dim % t == 0 and t % align == 0.

    Falls back to the full dimension only if no aligned divisor exists
    (always legal for Mosaic since a full-dim block bypasses the (8,128)
    divisibility rule)."""
    if dim <= pref:
        return dim
    for t in range(min(pref, dim), 0, -1):
        if dim % t == 0 and t % align == 0:
            return t
    return dim


# ---------------------------------------------------------------------------
# Kernel 1: plain tiled linear   y = x @ wT + b        (wT already [K, N])
# ---------------------------------------------------------------------------
def _linear_kernel(x_ref, w_ref, b_ref, o_ref, acc_ref):
    @pl.when(pl.program_id(2) == 0)
    def _init():
        acc_ref[...] = jnp.zeros_like(acc_ref)

    acc_ref[...] += jnp.dot(x_ref[...], w_ref[...],
                            preferred_element_type=jnp.float32)

    @pl.when(pl.program_id(2) == pl.num_programs(2) - 1)
    def _fin():
        o_ref[...] = (acc_ref[...] + b_ref[...]).astype(o_ref.dtype)


def linear(x, wT, b, *, tm_pref=256, tn_pref=256, tk_pref=512):
    M, K = x.shape
    N = wT.shape[-1]
    tm = _pick_tile(M, tm_pref, 8)
    tn = _pick_tile(N, tn_pref, 128)
    tk = _pick_tile(K, tk_pref, 128)
    return pl.pallas_call(
        _linear_kernel,
        out_shape=jax.ShapeDtypeStruct((M, N), x.dtype),
        grid=(M // tm, N // tn, K // tk),
        in_specs=[
            pl.BlockSpec((tm, tk), lambda i, j, k: (i, k)),
            pl.BlockSpec((tk, tn), lambda i, j, k: (k, j)),
            pl.BlockSpec((1, tn), lambda i, j, k: (0, j)),
        ],
        out_specs=pl.BlockSpec((tm, tn), lambda i, j, k: (i, j)),
        scratch_shapes=[pltpu.VMEM((tm, tn), jnp.float32)],
        compiler_params=pltpu.CompilerParams(
            dimension_semantics=("parallel", "parallel", "arbitrary"),
            vmem_limit_bytes=_VMEM_LIMIT),
    )(x, wT, b.reshape(1, N))


# ---------------------------------------------------------------------------
# Kernel 2: fused QKV projection for self-attention.
#   Reads each x tile ONCE and drives three matmuls against wq/wk/wv, emitting
#   q, k, v as three separate lane-dense [M, D] outputs (no activation stack).
# ---------------------------------------------------------------------------
def _fused_qkv_kernel(x_ref, wq_ref, wk_ref, wv_ref, bq_ref, bk_ref, bv_ref,
                      q_out, k_out, v_out, accq, acck, accv):
    @pl.when(pl.program_id(2) == 0)
    def _init():
        accq[...] = jnp.zeros_like(accq)
        acck[...] = jnp.zeros_like(acck)
        accv[...] = jnp.zeros_like(accv)

    x = x_ref[...]
    accq[...] += jnp.dot(x, wq_ref[...], preferred_element_type=jnp.float32)
    acck[...] += jnp.dot(x, wk_ref[...], preferred_element_type=jnp.float32)
    accv[...] += jnp.dot(x, wv_ref[...], preferred_element_type=jnp.float32)

    @pl.when(pl.program_id(2) == pl.num_programs(2) - 1)
    def _fin():
        q_out[...] = (accq[...] + bq_ref[...]).astype(q_out.dtype)
        k_out[...] = (acck[...] + bk_ref[...]).astype(k_out.dtype)
        v_out[...] = (accv[...] + bv_ref[...]).astype(v_out.dtype)


def fused_qkv_projection(x, wqT, wkT, wvT, bq, bk, bv,
                         *, tm_pref=256, tn_pref=256, tk_pref=512):
    M, K = x.shape
    N = wqT.shape[-1]
    tm = _pick_tile(M, tm_pref, 8)
    tn = _pick_tile(N, tn_pref, 128)
    tk = _pick_tile(K, tk_pref, 128)
    w_spec = pl.BlockSpec((tk, tn), lambda i, j, k: (k, j))
    b_spec = pl.BlockSpec((1, tn), lambda i, j, k: (0, j))
    o_spec = pl.BlockSpec((tm, tn), lambda i, j, k: (i, j))
    o_shape = jax.ShapeDtypeStruct((M, N), x.dtype)
    return pl.pallas_call(
        _fused_qkv_kernel,
        out_shape=(o_shape, o_shape, o_shape),
        grid=(M // tm, N // tn, K // tk),
        in_specs=[
            pl.BlockSpec((tm, tk), lambda i, j, k: (i, k)),
            w_spec, w_spec, w_spec,
            b_spec, b_spec, b_spec,
        ],
        out_specs=(o_spec, o_spec, o_spec),
        scratch_shapes=[pltpu.VMEM((tm, tn), jnp.float32)] * 3,
        compiler_params=pltpu.CompilerParams(
            dimension_semantics=("parallel", "parallel", "arbitrary"),
            vmem_limit_bytes=_VMEM_LIMIT),
    )(x, wqT, wkT, wvT, bq.reshape(1, N), bk.reshape(1, N), bv.reshape(1, N))


# ---------------------------------------------------------------------------
# Kernel 3: fused-head flash attention with in-kernel full-width RoPE.
#   grid = (B, Sq//tq, Sk//tk); heads are sliced internally with static lane
#   slices; output is a single lane-dense [tq, D] store per query tile.
# ---------------------------------------------------------------------------
def _swap_halves(x, H, Hd):
    """Per head, swap the [even | odd] halves: used for the full-width RoPE."""
    Hd2 = Hd // 2
    parts = []
    for h in range(H):
        lo, mid, hi = h * Hd, h * Hd + Hd2, (h + 1) * Hd
        parts.append(x[:, mid:hi])
        parts.append(x[:, lo:mid])
    return jnp.concatenate(parts, axis=-1)


_NT_DNUMS = (((1,), (1,)), ((), ()))   # contract last dim of both operands


def _make_attn_kernel(H, Hd, tq, tk, has_mask, causal):
    def body(q_ref, k_ref, v_ref, cq_ref, sq_ref, ck_ref, sk_ref, mask_ref,
             o_ref, m_sc, l_sc, acc_sc, qr_sc):
        qi = pl.program_id(1)
        ki = pl.program_id(2)

        # ---- per-(b, q-tile) init + query RoPE (once, reused over ki) -------
        @pl.when(ki == 0)
        def _init():
            m_sc[...] = jnp.full_like(m_sc, _MASK_NEG)
            l_sc[...] = jnp.zeros_like(l_sc)
            acc_sc[...] = jnp.zeros_like(acc_sc)
            q = q_ref[...]                                   # [tq, D] lane-dense
            # full-width RoPE: 2 muls + 1 add; 1/sqrt(Hd) folded into tables.
            qr = q * cq_ref[...] + _swap_halves(q, H, Hd) * sq_ref[...]
            qr_sc[...] = qr.astype(qr_sc.dtype)

        def _compute_tile():
            # ---- key RoPE for this Sk tile (full width, no scratch) ---------
            k = k_ref[...]                                   # [tk, D]
            kr = (k * ck_ref[...] +
                  _swap_halves(k, H, Hd) * sk_ref[...]).astype(k.dtype)
            v = v_ref[...]                                   # [tk, D]
            qr = qr_sc[...]

            # ---- mask for this (q-tile, k-tile) -----------------------------
            if causal:
                rows = lax.broadcasted_iota(jnp.int32, (tq, tk), 0) + qi * tq
                cols = lax.broadcasted_iota(jnp.int32, (tq, tk), 1) + ki * tk
                keep = rows >= cols
            elif has_mask:
                keep = mask_ref[...] != 0                    # int8 tile
            else:
                keep = None

            # ---- per-head flash update (batched m/l bookkeeping) ------------
            m_prev = m_sc[...]                               # [tq, H]
            l_prev = l_sc[...]
            m_cols, l_cols = [], []
            for h in range(H):
                lo, hi = h * Hd, (h + 1) * Hd
                # NT matmul: contract last dims, no explicit transpose.
                s = lax.dot_general(qr[:, lo:hi], kr[:, lo:hi], _NT_DNUMS,
                                    preferred_element_type=jnp.float32)
                if keep is not None:
                    s = jnp.where(keep, s, _MASK_NEG)
                m_p = m_prev[:, h:h + 1]
                m_n = jnp.maximum(m_p, jnp.max(s, axis=-1, keepdims=True))
                alpha = jnp.exp(m_p - m_n)
                p = jnp.exp(s - m_n)
                l_cols.append(alpha * l_prev[:, h:h + 1]
                              + jnp.sum(p, axis=-1, keepdims=True))
                m_cols.append(m_n)
                acc_sc[:, lo:hi] = alpha * acc_sc[:, lo:hi] + jnp.dot(
                    p.astype(v.dtype), v[:, lo:hi],
                    preferred_element_type=jnp.float32)
            m_sc[...] = jnp.concatenate(m_cols, axis=-1)     # one [tq, H] store
            l_sc[...] = jnp.concatenate(l_cols, axis=-1)
            # TODO(synk): nn.Dropout on the attention weights is identity in
            # eval mode; stochastic dropout is not implemented here.

        if causal:
            # Skip tiles that lie entirely above the diagonal.
            @pl.when(ki * tk <= qi * tq + (tq - 1))
            def _run():
                _compute_tile()
        else:
            _compute_tile()

        # ---- finalize: normalize and emit one lane-dense [tq, D] store ------
        @pl.when(ki == pl.num_programs(2) - 1)
        def _fin():
            inv_l = pl.reciprocal(l_sc[...], approx=False)   # [tq, H], exact
            acc = acc_sc[...]
            cols = []
            for h in range(H):
                lo, hi = h * Hd, (h + 1) * Hd
                cols.append(acc[:, lo:hi] * inv_l[:, h:h + 1])
            o_ref[...] = jnp.concatenate(cols, axis=-1).astype(o_ref.dtype)

    if has_mask:
        def kernel(q_ref, k_ref, v_ref, cq_ref, sq_ref, ck_ref, sk_ref,
                   mask_ref, o_ref, m_sc, l_sc, acc_sc, qr_sc):
            body(q_ref, k_ref, v_ref, cq_ref, sq_ref, ck_ref, sk_ref, mask_ref,
                 o_ref, m_sc, l_sc, acc_sc, qr_sc)
    else:
        def kernel(q_ref, k_ref, v_ref, cq_ref, sq_ref, ck_ref, sk_ref,
                   o_ref, m_sc, l_sc, acc_sc, qr_sc):
            body(q_ref, k_ref, v_ref, cq_ref, sq_ref, ck_ref, sk_ref, None,
                 o_ref, m_sc, l_sc, acc_sc, qr_sc)

    return kernel


# ---------------------------------------------------------------------------
# One-time parameter prep (hoisted off the hot path)
# ---------------------------------------------------------------------------
def prepare_mha_params(params, cos_tab, sin_tab, num_heads, model_dim):
    """Permute q/k weight rows so each head comes out as [even | odd], build
    transposed [K, N] weights and full-width [max_seq, D] rotary tables with
    the 1/sqrt(Hd) scale folded into the query tables."""
    H = num_heads
    D = model_dim
    Hd = D // H
    scale = 1.0 / math.sqrt(Hd)

    perm = (jnp.arange(H)[:, None] * Hd
            + jnp.concatenate([jnp.arange(0, Hd, 2),
                               jnp.arange(1, Hd, 2)])[None, :]).reshape(-1)
    wq_p, bq_p = params["wq"][perm], params["bq"][perm]
    wk_p, bk_p = params["wk"][perm], params["bk"][perm]

    cos = cos_tab.astype(jnp.float32)                 # [max_seq, Hd/2]
    sin = sin_tab.astype(jnp.float32)
    cos_head = jnp.concatenate([cos, cos], axis=-1)   # [max_seq, Hd]
    sin_head = jnp.concatenate([-sin, sin], axis=-1)  # sign folded in
    cos_full = jnp.tile(cos_head, (1, H))             # [max_seq, D]
    sin_full = jnp.tile(sin_head, (1, H))

    return {
        "H": H, "Hd": Hd, "D": D,
        "wqT": wq_p.T, "wkT": wk_p.T, "wvT": params["wv"].T,
        "woT": params["wo"].T,
        "bq": bq_p, "bk": bk_p, "bv": params["bv"], "bo": params["bo"],
        "cos_q": cos_full * scale, "sin_q": sin_full * scale,
        "cos_k": cos_full, "sin_k": sin_full,
    }


# ---------------------------------------------------------------------------
# Forward wrapper reproducing MultiHeadAttention.forward (eval mode)
# ---------------------------------------------------------------------------
def multi_head_attention(query, key, value, prep, mask=None, *, causal=False):
    B, Sq, D = query.shape
    _, Sk, _ = key.shape
    H, Hd = prep["H"], prep["Hd"]
    dtype = query.dtype
    assert not (causal and mask is not None), \
        "pass either causal=True or an explicit mask, not both"

    # -- projections ---------------------------------------------------------
    if (query is key) and (key is value):
        # self-attention: single pallas_call, x read once, 3 lane-dense outputs
        q2, k2, v2 = fused_qkv_projection(
            query.reshape(-1, D), prep["wqT"], prep["wkT"], prep["wvT"],
            prep["bq"], prep["bk"], prep["bv"])
    else:
        q2 = linear(query.reshape(-1, D), prep["wqT"], prep["bq"])
        k2 = linear(key.reshape(-1, D), prep["wkT"], prep["bk"])
        v2 = linear(value.reshape(-1, D), prep["wvT"], prep["bv"])
    q = q2.reshape(B, Sq, D)
    k = k2.reshape(B, Sk, D)
    v = v2.reshape(B, Sk, D)

    cos_q, sin_q = prep["cos_q"][:Sq], prep["sin_q"][:Sq]
    cos_k, sin_k = prep["cos_k"][:Sk], prep["sin_k"][:Sk]

    # -- attention tiles (chip-aware; see _ATTN_TILE_PREF / _VMEM_LIMIT) ------
    has_mask = mask is not None
    tq = _pick_tile(Sq, _ATTN_TILE_PREF, 8)
    tk = _pick_tile(Sk, _ATTN_TILE_PREF, 128 if has_mask else 8)

    in_specs = [
        pl.BlockSpec((None, tq, D), lambda b, qi, ki: (b, qi, 0)),
        pl.BlockSpec((None, tk, D), lambda b, qi, ki: (b, ki, 0)),
        pl.BlockSpec((None, tk, D), lambda b, qi, ki: (b, ki, 0)),
        pl.BlockSpec((tq, D), lambda b, qi, ki: (qi, 0)),
        pl.BlockSpec((tq, D), lambda b, qi, ki: (qi, 0)),
        pl.BlockSpec((tk, D), lambda b, qi, ki: (ki, 0)),
        pl.BlockSpec((tk, D), lambda b, qi, ki: (ki, 0)),
    ]
    inputs = [q, k, v, cos_q, sin_q, cos_k, sin_k]
    if has_mask:
        assert mask.ndim == 4 and mask.shape[1] == 1, \
            "mask must broadcast over heads: [B,1,Sq,Sk] or [1,1,Sq,Sk]"
        Bm = mask.shape[0]
        # TODO(synk): precompute this int8 mask once outside the step when the
        # mask is static; here it is a cheap [Bm,Sq,Sk] cast per call.
        mask_i8 = (mask.reshape(Bm, Sq, Sk) != 0).astype(jnp.int8)
        if Bm == B:
            in_specs.append(
                pl.BlockSpec((None, tq, tk), lambda b, qi, ki: (b, qi, ki)))
        else:   # shared mask: shipped once, not broadcast over the batch
            in_specs.append(
                pl.BlockSpec((None, tq, tk), lambda b, qi, ki: (0, qi, ki)))
        inputs.append(mask_i8)

    kernel = _make_attn_kernel(H, Hd, tq, tk, has_mask, causal)
    ctx = pl.pallas_call(
        kernel,
        out_shape=jax.ShapeDtypeStruct((B, Sq, D), dtype),
        grid=(B, Sq // tq, Sk // tk),
        in_specs=in_specs,
        out_specs=pl.BlockSpec((None, tq, D), lambda b, qi, ki: (b, qi, 0)),
        scratch_shapes=[
            pltpu.VMEM((tq, H), jnp.float32),    # running max, per head
            pltpu.VMEM((tq, H), jnp.float32),    # running denominator
            pltpu.VMEM((tq, D), jnp.float32),    # context accumulator
            pltpu.VMEM((tq, D), dtype),          # rotated Q (MXU-operand dtype)
        ],
        compiler_params=pltpu.CompilerParams(
            dimension_semantics=("parallel", "parallel", "arbitrary"),
            vmem_limit_bytes=_VMEM_LIMIT),
    )(*inputs)

    # -- output projection ----------------------------------------------------
    out = linear(ctx.reshape(-1, D), prep["woT"], prep["bo"])
    return out.reshape(B, Sq, D)


# ---------------------------------------------------------------------------
# Pure-JAX reference (mirrors the PyTorch forward exactly, eval mode)
# ---------------------------------------------------------------------------
def reference_mha(query, key, value, params, mask, num_heads, cos_tab, sin_tab):
    B, Sq, D = query.shape
    _, Sk, _ = key.shape
    Hd = D // num_heads

    def lin(x, w, b):
        return x @ w.T + b

    q = lin(query, params["wq"], params["bq"])
    k = lin(key, params["wk"], params["bk"])
    v = lin(value, params["wv"], params["bv"])
    q = q.reshape(B, Sq, num_heads, Hd).transpose(0, 2, 1, 3)
    k = k.reshape(B, Sk, num_heads, Hd).transpose(0, 2, 1, 3)
    v = v.reshape(B, Sk, num_heads, Hd).transpose(0, 2, 1, 3)

    def rope(x, cos, sin):
        x1, x2 = x[..., 0::2], x[..., 1::2]
        return jnp.concatenate([x1 * cos - x2 * sin, x1 * sin + x2 * cos], axis=-1)

    qT, kT = q.transpose(0, 2, 1, 3), k.transpose(0, 2, 1, 3)
    cos_q = cos_tab[:Sq][None, :, None, :]
    sin_q = sin_tab[:Sq][None, :, None, :]
    cos_k = cos_tab[:Sk][None, :, None, :]
    sin_k = sin_tab[:Sk][None, :, None, :]
    q = rope(qT, cos_q, sin_q).transpose(0, 2, 1, 3)
    k = rope(kT, cos_k, sin_k).transpose(0, 2, 1, 3)

    scores = jnp.einsum('bhqd,bhkd->bhqk', q, k) / math.sqrt(Hd)
    if mask is not None:
        scores = jnp.where(mask == 0, -jnp.inf, scores)
    attn = jax.nn.softmax(scores, axis=-1)
    ctx = jnp.einsum('bhqk,bhkd->bhqd', attn, v)
    ctx = ctx.transpose(0, 2, 1, 3).reshape(B, Sq, D)
    return lin(ctx, params["wo"], params["bo"])


if __name__ == "__main__":
    B, S, model_dim, num_heads = 2, 8, 32, 4
    head_dim = model_dim // num_heads

    root = jax.random.PRNGKey(0)
    ks = jax.random.split(root, 12)
    wscale = 0.05
    params = {
        "wq": jax.random.normal(ks[0], (model_dim, model_dim), jnp.float32) * wscale,
        "bq": jax.random.normal(ks[1], (model_dim,), jnp.float32) * wscale,
        "wk": jax.random.normal(ks[2], (model_dim, model_dim), jnp.float32) * wscale,
        "bk": jax.random.normal(ks[3], (model_dim,), jnp.float32) * wscale,
        "wv": jax.random.normal(ks[4], (model_dim, model_dim), jnp.float32) * wscale,
        "bv": jax.random.normal(ks[5], (model_dim,), jnp.float32) * wscale,
        "wo": jax.random.normal(ks[6], (model_dim, model_dim), jnp.float32) * wscale,
        "bo": jax.random.normal(ks[7], (model_dim,), jnp.float32) * wscale,
    }

    # rotary tables (same construction as RotaryEmbedding)
    max_seq_len = 64
    inv_freq = 1.0 / (10000 ** (jnp.arange(0, head_dim, 2, dtype=jnp.float32)
                                / head_dim))
    positions = jnp.arange(max_seq_len, dtype=jnp.float32)
    sinusoid = positions[:, None] * inv_freq[None, :]
    cos_tab, sin_tab = jnp.cos(sinusoid), jnp.sin(sinusoid)

    # one-time prep (head permutation, transposed weights, tiled rope tables)
    prep = prepare_mha_params(params, cos_tab, sin_tab, num_heads, model_dim)

    query = jax.random.normal(ks[8], (B, S, model_dim), jnp.float32)
    key_in = jax.random.normal(ks[9], (B, S, model_dim), jnp.float32)
    value = jax.random.normal(ks[10], (B, S, model_dim), jnp.float32)
    x_self = jax.random.normal(ks[11], (B, S, model_dim), jnp.float32)
    # causal mask, shape [1, 1, S, S] (same convention as the PyTorch module)
    mask = jnp.tril(jnp.ones((S, S), jnp.float32))[None, None]

    # Path 1: distinct q/k/v + user mask (general path, int8 mask shipped once)
    out_masked = multi_head_attention(query, key_in, value, prep, mask)
    # Path 2: self-attention (fused QKV) + in-kernel causal mask with tile skip
    out_causal = multi_head_attention(x_self, x_self, x_self, prep,
                                      None, causal=True)
    out_masked, out_causal = jax.block_until_ready((out_masked, out_causal))

    ref_masked = reference_mha(query, key_in, value, params, mask, num_heads,
                               cos_tab, sin_tab)
    ref_causal = reference_mha(x_self, x_self, x_self, params, mask, num_heads,
                               cos_tab, sin_tab)
    assert out_masked.shape == (B, S, model_dim)
    assert jnp.allclose(out_masked, ref_masked, atol=2e-3, rtol=2e-3), \
        "masked mismatch"
    assert jnp.allclose(out_causal, ref_causal, atol=2e-3, rtol=2e-3), \
        "causal mismatch"
    print("KERNEL_OK")
</pallas_src>

<mosaic_0001>
module attributes {stable_mosaic.version = 11 : i64} {
  func.func @_linear_kernel(%arg0: i32, %arg1: i32, %arg2: i32, %arg3: memref<16x32xf32, #tpu.memory_space<vmem>>, %arg4: memref<32x32xf32, #tpu.memory_space<vmem>>, %arg5: memref<1x32xf32, #tpu.memory_space<vmem>>, %arg6: memref<16x32xf32, #tpu.memory_space<vmem>>, %arg7: memref<16x32xf32, #tpu.memory_space<vmem>>) attributes {dimension_semantics = [#tpu.dimension_semantics<parallel>, #tpu.dimension_semantics<parallel>, #tpu.dimension_semantics<arbitrary>], iteration_bounds = array<i64: 1, 1, 1>, scalar_prefetch = 0 : i64, scratch_operands = 1 : i64, tpu.core_type = #tpu.core_type<tc>, window_params = [{transform_indices = @transform_0, window_bounds = array<i64: 16, 32>}, {transform_indices = @transform_1, window_bounds = array<i64: 32, 32>}, {transform_indices = @transform_2, window_bounds = array<i64: 1, 32>}, {transform_indices = @transform_3, window_bounds = array<i64: 16, 32>}]} {
    %c0_i32 = arith.constant 0 : i32
    %0 = arith.cmpi eq, %arg2, %c0_i32 : i32
    %1 = arith.extui %0 : i1 to i32
    %c0_i32_0 = arith.constant 0 : i32
    %2 = arith.cmpi ne, %1, %c0_i32_0 : i32
    scf.if %2 {
      %cst_10 = arith.constant 0.000000e+00 : f32
      %12 = vector.broadcast %cst_10 : f32 to vector<16x32xf32>
      %c0_11 = arith.constant 0 : index
      %c0_12 = arith.constant 0 : index
      %13 = vector.load %arg7[%c0_11, %c0_12] : memref<16x32xf32, #tpu.memory_space<vmem>>, vector<16x32xf32>
      tpu.vector_store %arg7[%c0_11, %c0_12], %12 {strides = array<i32>} : memref<16x32xf32, #tpu.memory_space<vmem>>, vector<16x32xf32>,
    } else {
    }
    %c0 = arith.constant 0 : index
    %c0_1 = arith.constant 0 : index
    %3 = vector.load %arg7[%c0, %c0_1] : memref<16x32xf32, #tpu.memory_space<vmem>>, vector<16x32xf32>
    %c0_2 = arith.constant 0 : index
    %c0_3 = arith.constant 0 : index
    %4 = vector.load %arg3[%c0_2, %c0_3] : memref<16x32xf32, #tpu.memory_space<vmem>>, vector<16x32xf32>
    %c0_4 = arith.constant 0 : index
    %c0_5 = arith.constant 0 : index
    %5 = vector.load %arg4[%c0_4, %c0_5] : memref<32x32xf32, #tpu.memory_space<vmem>>, vector<32x32xf32>
    %cst = arith.constant dense<0.000000e+00> : vector<16x32xf32>
    %6 = tpu.matmul %4, %5, %cst {dimension_numbers = #tpu.dot_dimension_numbers<[1], [0], [0], [1], [0, 0, 1, 1], [], []>} : vector<16x32xf32>, vector<32x32xf32>, vector<16x32xf32> -> vector<16x32xf32>
    %7 = arith.addf %3, %6 : vector<16x32xf32>
    %c0_6 = arith.constant 0 : index
    %c0_7 = arith.constant 0 : index
    %8 = vector.load %arg7[%c0_6, %c0_7] : memref<16x32xf32, #tpu.memory_space<vmem>>, vector<16x32xf32>
    tpu.vector_store %arg7[%c0_6, %c0_7], %7 {strides = array<i32>} : memref<16x32xf32, #tpu.memory_space<vmem>>, vector<16x32xf32>,
    %c0_i32_8 = arith.constant 0 : i32
    %9 = arith.cmpi eq, %arg2, %c0_i32_8 : i32
    %10 = arith.extui %9 : i1 to i32
    %c0_i32_9 = arith.constant 0 : i32
    %11 = arith.cmpi ne, %10, %c0_i32_9 : i32
    scf.if %11 {
      %c0_10 = arith.constant 0 : index
      %c0_11 = arith.constant 0 : index
      %12 = vector.load %arg7[%c0_10, %c0_11] : memref<16x32xf32, #tpu.memory_space<vmem>>, vector<16x32xf32>
      %c0_12 = arith.constant 0 : index
      %c0_13 = arith.constant 0 : index
      %13 = vector.load %arg5[%c0_12, %c0_13] : memref<1x32xf32, #tpu.memory_space<vmem>>, vector<1x32xf32>
      %14 = vector.broadcast %13 : vector<1x32xf32> to vector<16x32xf32>
      %15 = arith.addf %12, %14 : vector<16x32xf32>
      %c0_14 = arith.constant 0 : index
      %c0_15 = arith.constant 0 : index
      %16 = vector.load %arg6[%c0_14, %c0_15] : memref<16x32xf32, #tpu.memory_space<vmem>>, vector<16x32xf32>
      tpu.vector_store %arg6[%c0_14, %c0_15], %15 {strides = array<i32>} : memref<16x32xf32, #tpu.memory_space<vmem>>, vector<16x32xf32>,
    } else {
    }
    return
  }
  func.func @transform_0(%arg0: i32, %arg1: i32, %arg2: i32) -> (i32, i32) {
    %c0_i32 = arith.constant 0 : i32
    return %arg0, %arg2 : i32, i32
  }
  func.func @transform_1(%arg0: i32, %arg1: i32, %arg2: i32) -> (i32, i32) {
    %c0_i32 = arith.constant 0 : i32
    return %arg2, %arg1 : i32, i32
  }
  func.func @transform_2(%arg0: i32, %arg1: i32, %arg2: i32) -> (i32, i32) {
    %c0_i32 = arith.constant 0 : i32
    %c0_i32_0 = arith.constant 0 : i32
    return %c0_i32, %arg1 : i32, i32
  }
  func.func @transform_3(%arg0: i32, %arg1: i32, %arg2: i32) -> (i32, i32) {
    %c0_i32 = arith.constant 0 : i32
    return %arg0, %arg1 : i32, i32
  }
}

</mosaic_0001>

<bundles_post_ra>
// kernel: tpu_custom_call.1
= control target key start
LH: loop header
LB: loop body
LE: loop exit
PB: predicated region body
PF: predicated region fallthrough
CT: control target
= control target key end

     0   :  { %8 = vsyncpa [#allocation4], 0  ;;  %s366_s0 = inlined_call_operand.hbm [shape: f32[16,32], index: 0, kind: input, shape index: {}]   ;;  %s367_s1 = inlined_call_operand.hbm [shape: f32[32,32], index: 1, kind: input, shape index: {}]   ;;  %s368_s2 = inlined_call_operand.vmem [shape: f32[1,32], index: 2, kind: input, shape index: {}]   ;;  %s369_s3 = inlined_call_operand.hbm [shape: f32[16,32], index: 3, kind: output, shape index: {}]  }
   0x1   :  { %9 = vsyncpa [#allocation7], 0 }
   0x2   :  { %10 = vsyncpa [#allocation5], 0  ;;  %s284_s12 = smov [#allocation3]   ;;  %s212_s16 = scalar_lea.hbm %s366_s0, 256 }
   0x3   :  { %s16_s13 = sshll.u32 %s284_s12, 4  ;;  %p213_p0 = scmp.ne.s32.totalorder %s366_s0, %s212_s16  ;;  %s17_s13 = int_to_ptr.vmem [resolvable:$true] %s16_s13 }
   0x4   :  { %p216_p1 = scmp.lt.u32.totalorder %s212_s16, %s366_s0 }
   0x6   :  { %p218_p2 = pnand %p216_p1, %p213_p0 }
   0x8   :  { %221 = shalt.err (!%p218_p2)
}
   0x9   :  { %s222_s21 = scalar_lea.vmem %s17_s13, 256  ;;  %p227_p4 = scmp.lt.s32.totalorder %s17_s13, %s17_s13 }
   0xa   :  { %p223_p3 = scmp.ne.s32.totalorder %s17_s13, %s222_s21  ;;  %p228_p5 = scmp.lt.s32.totalorder %s222_s21, %s222_s21 }
   0xc   :  { %p229_p6 = por %p228_p5, %p227_p4 }
   0xe   :  { %p230_p7 = pnand %p229_p6, %p223_p3 }
  0x10   :  { %233 = shalt.err (!%p230_p7)
}
  0x11   :  { %s285_s22 = smov 128   ;;  %s286_s23 = smov 8  }
  0x12   :  { %22 = dma.hbm_to_vmem [thread:$0]  %s366_s0, 256, %s17_s13, [#allocation4], %s285_s22, %s285_s22, %s286_s23  }
  0x13   :  { %s287_s26 = smov [#allocation6]   ;;  %s234_s30 = scalar_lea.hbm %s367_s1, 512 }
  0x14   :  { %s28_s27 = sshll.u32 %s287_s26, 4  ;;  %p235_p8 = scmp.ne.s32.totalorder %s367_s1, %s234_s30  ;;  %s29_s27 = int_to_ptr.vmem [resolvable:$true] %s28_s27 }
  0x15   :  { %p238_p9 = scmp.lt.u32.totalorder %s234_s30, %s367_s1 }
  0x17   :  { %p240_p10 = pnand %p238_p9, %p235_p8 }
  0x19   :  { %243 = shalt.err (!%p240_p10)
}
  0x1a   :  { %s244_s8 = scalar_lea.vmem %s29_s27, 512  ;;  %p249_p12 = scmp.lt.s32.totalorder %s29_s27, %s29_s27 }
  0x1b   :  { %p245_p11 = scmp.ne.s32.totalorder %s29_s27, %s244_s8  ;;  %p250_p13 = scmp.lt.s32.totalorder %s244_s8, %s244_s8 }
  0x1d   :  { %p251_p0 = por %p250_p13, %p249_p12 }
  0x1f   :  { %p252_p1 = pnand %p251_p0, %p245_p11 }
  0x21   :  { %255 = shalt.err (!%p252_p1)
}
  0x22   :  { %34 = dma.hbm_to_vmem [thread:$0]  %s367_s1, 512, %s29_s27, [#allocation7], %s285_s22, %s285_s22, %s286_s23  }
  0x23   :  { %278 = dma.done.wait [#allocation4], 256  }
  0x24   :  { %279 = vsyncadd [#allocation4], 4294967040 }
  0x25   :  { %280 = dma.done.wait [#allocation7], 512  }
  0x26   :  { %281 = vsyncadd [#allocation7], 4294966784  ;;  %vm47_vm0 = vcmask 261120   ;;  %v288_v0 = vmov 0.0   ;;  %v54_v1 = vld [vmem:[#allocation6] sm:$0xff]  ;;  %v55_v2 = vld [vmem:[#allocation6 + $0x8] sm:$0xff] }
  0x27   :  { %49 = vst.msk [vmem:[#allocation2 + $0x8] sm:$0xff] %vm47_vm0, %v288_v0  ;;  %48 = vst.msk [vmem:[#allocation2] sm:$0xff] %vm47_vm0, %v288_v0  ;;  %v56_v3 = vld [vmem:[#allocation6 + $0x10] sm:$0xff]  ;;  %v198_v4 = vpack.c.bf16 %v55_v2, %v54_v1  ;;  %v57_v5 = vld [vmem:[#allocation6 + $0x18] sm:$0xff]  ;;  %s289_s11 = smov [#allocation8]  }
  0x28   :  { %v52_v6 = vld [vmem:[#allocation3] sm:$0xff]  ;;  %v202_v7 = vpack.c.bf16 %v57_v5, %v56_v3  ;;  %v53_v8 = vld [vmem:[#allocation3 + $0x8] sm:$0xff]  ;;  %v180_v15 = vld [vmem:[%s368_s2] ss:$0 sm:$0xff]  ;;  %s165_s12 = sshll.u32 %s289_s11, 4  ;;  %s166_s12 = int_to_ptr.vmem [resolvable:$true] %s165_s12 }
  0x29   :  { %195 = vmatprep.mubr.msk.f32.mxu0 %vm47_vm0, %v52_v6  ;;  %199 = vmatprep.subr.bf16.mxu0 %v198_v4  ;;  %s256_s13 = scalar_lea.vmem %s166_s12, 256  ;;  %p261_p3 = scmp.lt.s32.totalorder %s166_s12, %s166_s12 }
  0x2a   :  { %201 = vmatpush3.bf16.msra.mxu0 %v198_v4  ;;  %p257_p2 = scmp.ne.s32.totalorder %s166_s12, %s256_s13  ;;  %p262_p4 = scmp.lt.s32.totalorder %s256_s13, %s256_s13 }
  0x2b   :  { %203 = vmatprep.subr.bf16.mxu0 %v202_v7 }
  0x2c   :  { %p263_p5 = por %p262_p4, %p261_p3 }
  0x2e   :  { %205 = vmatpush3.bf16.msra.mxu0 %v202_v7  ;;  %v51_v9 = vld [vmem:[#allocation2 + $0x8] sm:$0xff]  ;;  %v50_v10 = vld [vmem:[#allocation2] sm:$0xff]  ;;  %p264_p6 = pnand %p263_p5, %p257_p2 }
  0x31   :  { %196 = vmatmul.mubr.msk.f32.vlgmr.msra.gmra.mrb[0].mxu0 %vm47_vm0, %v53_v8 }
 0x104   :  { %v197_v11 = vpop.f32.mrb[0].mxu0 }
 0x105   :  { %v141_v12 = vadd.f32 %v197_v11, %v51_v9  ;;  %v131_v13 = vpop.f32.mrb[1].mxu0 }
 0x106   :  { %v140_v14 = vadd.f32 %v131_v13, %v50_v10 }
 0x107   :  { %143 = vst.msk [vmem:[#allocation2 + $0x8] sm:$0xff] %vm47_vm0, %v141_v12 }
 0x108   :  { %142 = vst.msk [vmem:[#allocation2] sm:$0xff] %vm47_vm0, %v140_v14 }
 0x10e   :  { %v148_v16 = vld [vmem:[#allocation2 + $0x8] sm:$0xff] }
 0x10f   :  { %v147_v17 = vld [vmem:[#allocation2] sm:$0xff]  ;;  %v157_v18 = vadd.f32 %v180_v15, %v148_v16 }
 0x110   :  { %v156_v19 = vadd.f32 %v180_v15, %v147_v17 }
 0x111   :  { %159 = vst.msk [vmem:[#allocation8 + $0x8] sm:$0xff] %vm47_vm0, %v157_v18 }
 0x112   :  { %158 = vst.msk [vmem:[#allocation8] sm:$0xff] %vm47_vm0, %v156_v19 }
 0x113   :  { %267 = shalt.err (!%p264_p6)
}
 0x114   :  { %s268_s15 = scalar_lea.hbm %s369_s3, 256 }
 0x115   :  { %p269_p7 = scmp.ne.s32.totalorder %s369_s3, %s268_s15  ;;  %p272_p8 = scmp.lt.u32.totalorder %s268_s15, %s369_s3 }
 0x117   :  { %p274_p9 = pnand %p272_p8, %p269_p7 }
 0x119   :  { %277 = shalt.err (!%p274_p9)
}
 0x11a   :  { %171 = dma.vmem_to_hbm [thread:$0]  %s166_s12, 256, %s369_s3, [#allocation5], %s285_s22, %s285_s22, %s286_s23  }
 0x11b   :  { %282 = dma.done.wait [#allocation5], 256  }
 0x11c   :  { %283 = vsyncadd [#allocation5], 4294967040 }
 0x11d   :  { %175 = vsyncpa [#allocation4], 1 }
 0x11e   :  { %176 = vsyncpa [#allocation7], 1 }
 0x11f   :  { %177 = vsyncpa [#allocation5], 1 }

</bundles_post_ra>
